<compile_context>
chip_gen: v7x
topology: tpu7x:2x2x1
jax: 0.10.0
libtpu: 0.0.40
codegen_flags: <defaults>
</compile_context>

<pallas_src>
import math

import jax
import jax.numpy as jnp
from jax import lax
from jax.experimental import pallas as pl
from jax.experimental.pallas import tpu as pltpu


def _sublane_pack(dtype):
    """Second-to-last-dim pack requirement for a dtype (8 f32, 16 bf16, 32 i8)."""
    return max(1, 8 * 4 // jnp.dtype(dtype).itemsize)


def _tiled_bytes(shape, dtype):
    """VMEM footprint of an array with (sublane, lane) tile padding."""
    dt = jnp.dtype(dtype)
    if len(shape) == 0:
        return dt.itemsize
    if len(shape) == 1:
        return ((int(shape[0]) + 127) // 128) * 128 * dt.itemsize
    sub = _sublane_pack(dt)
    lanes = ((int(shape[-1]) + 127) // 128) * 128
    subl = ((int(shape[-2]) + sub - 1) // sub) * sub
    lead = 1
    for d in shape[:-2]:
        lead *= int(d)
    return lead * subl * lanes * dt.itemsize


def _choose_row_tile(H, W, target_rows, out_dtype):
    """Largest row tile TH (divisor of H) such that TH*W is a legal
    second-to-last output block dim (multiple of the out-dtype sublane pack,
    or the full H*W) and TH*W <= target_rows."""
    pack = _sublane_pack(out_dtype)
    cands = [th for th in range(1, H + 1)
             if H % th == 0 and ((th * W) % pack == 0 or th == H)]
    fits = [th for th in cands if th * W <= target_rows]
    return max(fits) if fits else min(cands)


def _make_kernel(H, W, Cin, Cout, TH):
    def kernel(x_ref, w_ref, o_ref, col_ref):
        # x_ref  : (1, H+2, W+2, Cin)  padded NHWC image (resident across row tiles)
        # w_ref  : (9*Cin, Cout)       packed weight, row order (kh, kw, cin) (resident)
        # o_ref  : (1, TH*W, Cout)     output row tile
        # col_ref: (TH*W, 9*Cin)       VMEM im2col scratch (compute dtype)
        t = pl.program_id(1)
        r0 = pl.multiple_of(t * TH, TH)      # top row of this tile (padded coords)

        # im2col: 9 tap windows stored straight into the col scratch; column
        # order (kh, kw, cin) matches the packed weight rows.
        for kh in range(3):
            for kw in range(3):
                tap = x_ref[0, pl.ds(r0 + kh, TH), pl.ds(kw, W), :]
                c0 = (kh * 3 + kw) * Cin
                col_ref[:, c0:c0 + Cin] = tap.reshape(TH * W, Cin)

        # Single MXU GEMM (K = 9*Cin) with f32 accumulation.
        acc = jnp.dot(col_ref[...], w_ref[...],
                      preferred_element_type=jnp.float32)
        o_ref[0] = acc.astype(o_ref.dtype)

    return kernel


def overlap_patch_embed(x_nchw, weight_oihw, *, compute_dtype=None,
                        target_rows_per_tile=2048):
    """x_nchw: (B, Cin, H, W); weight_oihw: (Cout, Cin, 3, 3).
    Returns (B, H*W, Cout), matching OverlapPatchEmbed.forward (bias=False)."""
    B, Cin, H, W = x_nchw.shape
    Cout = weight_oihw.shape[0]
    out_dtype = x_nchw.dtype

    # Default: keep the element-wise/layout path in the input dtype (v5e has
    # no bf16 VPU); narrow GEMM operands only if requested or input is bf16.
    if compute_dtype is None:
        compute_dtype = x_nchw.dtype
    cdt = jnp.dtype(compute_dtype)

    # Layout glue (one fused XLA pass): NCHW -> NHWC, fold padding=1 once,
    # cast to compute dtype.
    # TODO(synk): accept NHWC activations directly to remove the transpose pass.
    x_pad = jnp.pad(jnp.transpose(x_nchw, (0, 2, 3, 1)),
                    ((0, 0), (1, 1), (1, 1), (0, 0))).astype(cdt)
    Hp, Wp = H + 2, W + 2

    # Pre-pack weight: OIHW -> rows (kh, kw, cin) x cols (cout) = (9*Cin, Cout).
    K9 = 9 * Cin
    w_packed = jnp.transpose(weight_oihw, (2, 3, 1, 0)).reshape(K9, Cout).astype(cdt)

    TH = _choose_row_tile(H, W, target_rows_per_tile, out_dtype)
    NH = H // TH
    rows = TH * W

    kernel = _make_kernel(H, W, Cin, Cout, TH)

    # VMEM budget with TILED footprints (lane dim -> 128, sublane -> dtype pack).
    est = (2 * _tiled_bytes((1, Hp, Wp, Cin), cdt)          # padded image (dbl-buffered over b)
           + 2 * _tiled_bytes((K9, Cout), cdt)              # packed weight
           + 2 * _tiled_bytes((1, rows, Cout), out_dtype)   # output row tile
           + _tiled_bytes((rows, K9), cdt)                  # im2col scratch
           + _tiled_bytes((rows, Cout), jnp.float32)        # f32 accumulator temp
           + _tiled_bytes((rows, K9), cdt))                 # headroom for tap temps
    try:
        phys = int(pltpu.get_tpu_info().vmem_capacity_bytes)
    except Exception:
        phys = 64 * 2**20                                   # conservative (v7x per-TC)
    cap = (40 * 2**20) if phys <= 64 * 2**20 else (96 * 2**20)
    vmem_limit = int(min(cap, max(16 * 2**20, est + 8 * 2**20)))
    vmem_limit = int(max(vmem_limit, est + 2 * 2**20))      # never starve the kernel

    out = pl.pallas_call(
        kernel,
        out_shape=jax.ShapeDtypeStruct((B, H * W, Cout), out_dtype),
        grid_spec=pltpu.PrefetchScalarGridSpec(
            num_scalar_prefetch=0,
            grid=(B, NH),
            in_specs=[
                # Padded image: resident across the row-tile axis (index map
                # ignores t); re-fetched only when b changes.
                # TODO(synk): for very large H*W with tiny Cin, deliver
                # pre-extracted (TH+2)-row halo tiles instead so per-core VMEM
                # residency and per-step DMA scale with TH (matters on v7x).
                pl.BlockSpec((1, Hp, Wp, Cin), lambda b, t: (b, 0, 0, 0)),
                # Packed weight: constant across the whole grid.
                pl.BlockSpec((K9, Cout), lambda b, t: (0, 0)),
            ],
            out_specs=pl.BlockSpec((1, rows, Cout), lambda b, t: (b, t, 0)),
            scratch_shapes=[pltpu.VMEM((rows, K9), cdt)],
        ),
        compiler_params=pltpu.CompilerParams(
            dimension_semantics=("parallel", "parallel"),
            vmem_limit_bytes=vmem_limit,
        ),
    )(x_pad, w_packed)

    return out


def _reference(x_nchw, weight_oihw):
    # Pure-JAX reference: conv2d (NCHW, OIHW), stride 1, pad 1, then rearrange.
    y = lax.conv_general_dilated(
        x_nchw, weight_oihw,
        window_strides=(1, 1), padding=((1, 1), (1, 1)),
        dimension_numbers=("NCHW", "OIHW", "NCHW"),
        precision=lax.Precision.HIGHEST,
    )
    B, C, H, W = y.shape
    return jnp.transpose(y, (0, 2, 3, 1)).reshape(B, H * W, C)


if __name__ == "__main__":
    key = jax.random.PRNGKey(0)
    kx, kw = jax.random.split(key)

    B, Cin, H, W = 2, 4, 16, 16
    embed_dim = 32

    x = jax.random.normal(kx, (B, Cin, H, W), dtype=jnp.float32)
    fan_in = Cin * 3 * 3
    bound = 1.0 / math.sqrt(fan_in)
    weight = jax.random.uniform(
        kw, (embed_dim, Cin, 3, 3), dtype=jnp.float32, minval=-bound, maxval=bound
    )

    ref = _reference(x, weight)

    # f32 path; small row-tile target forces 2 spatial tiles (exercises tiling).
    out = overlap_patch_embed(x, weight, target_rows_per_tile=128)
    out = jax.block_until_ready(out)
    assert out.shape == (B, H * W, embed_dim), out.shape
    assert jnp.allclose(out, ref, atol=1e-3, rtol=1e-3), "f32 mismatch vs reference"

    # bf16-operand path (f32 accumulation), single spatial tile; looser tolerance.
    out_bf16 = overlap_patch_embed(x, weight, compute_dtype=jnp.bfloat16)
    out_bf16 = jax.block_until_ready(out_bf16)
    assert out_bf16.shape == (B, H * W, embed_dim), out_bf16.shape
    assert jnp.allclose(out_bf16, ref, atol=5e-2, rtol=5e-2), "bf16 mismatch vs reference"

    print("KERNEL_OK")
</pallas_src>

<mosaic_0001>
module attributes {stable_mosaic.version = 11 : i64} {
  func.func @kernel(%arg0: i32, %arg1: i32, %arg2: memref<1x18x18x4xf32, #tpu.memory_space<vmem>>, %arg3: memref<36x32xf32, #tpu.memory_space<vmem>>, %arg4: memref<1x128x32xf32, #tpu.memory_space<vmem>>, %arg5: memref<128x36xf32, #tpu.memory_space<vmem>>) attributes {dimension_semantics = [#tpu.dimension_semantics<parallel>, #tpu.dimension_semantics<parallel>], iteration_bounds = array<i64: 2, 2>, scalar_prefetch = 0 : i64, scratch_operands = 1 : i64, tpu.core_type = #tpu.core_type<tc>, window_params = [{transform_indices = @transform_0, window_bounds = array<i64: 1, 18, 18, 4>}, {pipeline_mode = #tpu.pipeline_mode<synchronous>, transform_indices = @transform_1, window_bounds = array<i64: 36, 32>}, {transform_indices = @transform_2, window_bounds = array<i64: 1, 128, 32>}]} {
    %c8_i32 = arith.constant 8 : i32
    %0 = arith.muli %arg1, %c8_i32 : i32
    %1 = tpu.assume_multiple %0, 8 : i32
    %c0_i32 = arith.constant 0 : i32
    %2 = arith.addi %1, %c0_i32 : i32
    %c0 = arith.constant 0 : index
    %3 = arith.index_cast %2 : i32 to index
    %c0_0 = arith.constant 0 : index
    %c0_1 = arith.constant 0 : index
    %4 = vector.load %arg2[%c0, %3, %c0_0, %c0_1] : memref<1x18x18x4xf32, #tpu.memory_space<vmem>>, vector<1x8x16x4xf32>
    %5 = vector.shape_cast %4 : vector<1x8x16x4xf32> to vector<8x16x4xf32>
    %6 = vector.shape_cast %5 : vector<8x16x4xf32> to vector<128x4xf32>
    %c0_2 = arith.constant 0 : index
    %c0_3 = arith.constant 0 : index
    %7 = vector.load %arg5[%c0_2, %c0_3] : memref<128x36xf32, #tpu.memory_space<vmem>>, vector<128x4xf32>
    tpu.vector_store %arg5[%c0_2, %c0_3], %6 {strides = array<i32>} : memref<128x36xf32, #tpu.memory_space<vmem>>, vector<128x4xf32>,
    %c0_i32_4 = arith.constant 0 : i32
    %8 = arith.addi %1, %c0_i32_4 : i32
    %c0_5 = arith.constant 0 : index
    %9 = arith.index_cast %8 : i32 to index
    %c1 = arith.constant 1 : index
    %c0_6 = arith.constant 0 : index
    %10 = vector.load %arg2[%c0_5, %9, %c1, %c0_6] : memref<1x18x18x4xf32, #tpu.memory_space<vmem>>, vector<1x8x16x4xf32>
    %11 = vector.shape_cast %10 : vector<1x8x16x4xf32> to vector<8x16x4xf32>
    %12 = vector.shape_cast %11 : vector<8x16x4xf32> to vector<128x4xf32>
    %c0_7 = arith.constant 0 : index
    %c4 = arith.constant 4 : index
    %13 = vector.load %arg5[%c0_7, %c4] : memref<128x36xf32, #tpu.memory_space<vmem>>, vector<128x4xf32>
    tpu.vector_store %arg5[%c0_7, %c4], %12 {strides = array<i32>} : memref<128x36xf32, #tpu.memory_space<vmem>>, vector<128x4xf32>,
    %c0_i32_8 = arith.constant 0 : i32
    %14 = arith.addi %1, %c0_i32_8 : i32
    %c0_9 = arith.constant 0 : index
    %15 = arith.index_cast %14 : i32 to index
    %c2 = arith.constant 2 : index
    %c0_10 = arith.constant 0 : index
    %16 = vector.load %arg2[%c0_9, %15, %c2, %c0_10] : memref<1x18x18x4xf32, #tpu.memory_space<vmem>>, vector<1x8x16x4xf32>
    %17 = vector.shape_cast %16 : vector<1x8x16x4xf32> to vector<8x16x4xf32>
    %18 = vector.shape_cast %17 : vector<8x16x4xf32> to vector<128x4xf32>
    %c0_11 = arith.constant 0 : index
    %c8 = arith.constant 8 : index
    %19 = vector.load %arg5[%c0_11, %c8] : memref<128x36xf32, #tpu.memory_space<vmem>>, vector<128x4xf32>
    tpu.vector_store %arg5[%c0_11, %c8], %18 {strides = array<i32>} : memref<128x36xf32, #tpu.memory_space<vmem>>, vector<128x4xf32>,
    %c1_i32 = arith.constant 1 : i32
    %20 = arith.addi %1, %c1_i32 : i32
    %c0_12 = arith.constant 0 : index
    %21 = arith.index_cast %20 : i32 to index
    %c0_13 = arith.constant 0 : index
    %c0_14 = arith.constant 0 : index
    %22 = vector.load %arg2[%c0_12, %21, %c0_13, %c0_14] : memref<1x18x18x4xf32, #tpu.memory_space<vmem>>, vector<1x8x16x4xf32>
    %23 = vector.shape_cast %22 : vector<1x8x16x4xf32> to vector<8x16x4xf32>
    %24 = vector.shape_cast %23 : vector<8x16x4xf32> to vector<128x4xf32>
    %c0_15 = arith.constant 0 : index
    %c12 = arith.constant 12 : index
    %25 = vector.load %arg5[%c0_15, %c12] : memref<128x36xf32, #tpu.memory_space<vmem>>, vector<128x4xf32>
    tpu.vector_store %arg5[%c0_15, %c12], %24 {strides = array<i32>} : memref<128x36xf32, #tpu.memory_space<vmem>>, vector<128x4xf32>,
    %c1_i32_16 = arith.constant 1 : i32
    %26 = arith.addi %1, %c1_i32_16 : i32
    %c0_17 = arith.constant 0 : index
    %27 = arith.index_cast %26 : i32 to index
    %c1_18 = arith.constant 1 : index
    %c0_19 = arith.constant 0 : index
    %28 = vector.load %arg2[%c0_17, %27, %c1_18, %c0_19] : memref<1x18x18x4xf32, #tpu.memory_space<vmem>>, vector<1x8x16x4xf32>
    %29 = vector.shape_cast %28 : vector<1x8x16x4xf32> to vector<8x16x4xf32>
    %30 = vector.shape_cast %29 : vector<8x16x4xf32> to vector<128x4xf32>
    %c0_20 = arith.constant 0 : index
    %c16 = arith.constant 16 : index
    %31 = vector.load %arg5[%c0_20, %c16] : memref<128x36xf32, #tpu.memory_space<vmem>>, vector<128x4xf32>
    tpu.vector_store %arg5[%c0_20, %c16], %30 {strides = array<i32>} : memref<128x36xf32, #tpu.memory_space<vmem>>, vector<128x4xf32>,
    %c1_i32_21 = arith.constant 1 : i32
    %32 = arith.addi %1, %c1_i32_21 : i32
    %c0_22 = arith.constant 0 : index
    %33 = arith.index_cast %32 : i32 to index
    %c2_23 = arith.constant 2 : index
    %c0_24 = arith.constant 0 : index
    %34 = vector.load %arg2[%c0_22, %33, %c2_23, %c0_24] : memref<1x18x18x4xf32, #tpu.memory_space<vmem>>, vector<1x8x16x4xf32>
    %35 = vector.shape_cast %34 : vector<1x8x16x4xf32> to vector<8x16x4xf32>
    %36 = vector.shape_cast %35 : vector<8x16x4xf32> to vector<128x4xf32>
    %c0_25 = arith.constant 0 : index
    %c20 = arith.constant 20 : index
    %37 = vector.load %arg5[%c0_25, %c20] : memref<128x36xf32, #tpu.memory_space<vmem>>, vector<128x4xf32>
    tpu.vector_store %arg5[%c0_25, %c20], %36 {strides = array<i32>} : memref<128x36xf32, #tpu.memory_space<vmem>>, vector<128x4xf32>,
    %c2_i32 = arith.constant 2 : i32
    %38 = arith.addi %1, %c2_i32 : i32
    %c0_26 = arith.constant 0 : index
    %39 = arith.index_cast %38 : i32 to index
    %c0_27 = arith.constant 0 : index
    %c0_28 = arith.constant 0 : index
    %40 = vector.load %arg2[%c0_26, %39, %c0_27, %c0_28] : memref<1x18x18x4xf32, #tpu.memory_space<vmem>>, vector<1x8x16x4xf32>
    %41 = vector.shape_cast %40 : vector<1x8x16x4xf32> to vector<8x16x4xf32>
    %42 = vector.shape_cast %41 : vector<8x16x4xf32> to vector<128x4xf32>
    %c0_29 = arith.constant 0 : index
    %c24 = arith.constant 24 : index
    %43 = vector.load %arg5[%c0_29, %c24] : memref<128x36xf32, #tpu.memory_space<vmem>>, vector<128x4xf32>
    tpu.vector_store %arg5[%c0_29, %c24], %42 {strides = array<i32>} : memref<128x36xf32, #tpu.memory_space<vmem>>, vector<128x4xf32>,
    %c2_i32_30 = arith.constant 2 : i32
    %44 = arith.addi %1, %c2_i32_30 : i32
    %c0_31 = arith.constant 0 : index
    %45 = arith.index_cast %44 : i32 to index
    %c1_32 = arith.constant 1 : index
    %c0_33 = arith.constant 0 : index
    %46 = vector.load %arg2[%c0_31, %45, %c1_32, %c0_33] : memref<1x18x18x4xf32, #tpu.memory_space<vmem>>, vector<1x8x16x4xf32>
    %47 = vector.shape_cast %46 : vector<1x8x16x4xf32> to vector<8x16x4xf32>
    %48 = vector.shape_cast %47 : vector<8x16x4xf32> to vector<128x4xf32>
    %c0_34 = arith.constant 0 : index
    %c28 = arith.constant 28 : index
    %49 = vector.load %arg5[%c0_34, %c28] : memref<128x36xf32, #tpu.memory_space<vmem>>, vector<128x4xf32>
    tpu.vector_store %arg5[%c0_34, %c28], %48 {strides = array<i32>} : memref<128x36xf32, #tpu.memory_space<vmem>>, vector<128x4xf32>,
    %c2_i32_35 = arith.constant 2 : i32
    %50 = arith.addi %1, %c2_i32_35 : i32
    %c0_36 = arith.constant 0 : index
    %51 = arith.index_cast %50 : i32 to index
    %c2_37 = arith.constant 2 : index
    %c0_38 = arith.constant 0 : index
    %52 = vector.load %arg2[%c0_36, %51, %c2_37, %c0_38] : memref<1x18x18x4xf32, #tpu.memory_space<vmem>>, vector<1x8x16x4xf32>
    %53 = vector.shape_cast %52 : vector<1x8x16x4xf32> to vector<8x16x4xf32>
    %54 = vector.shape_cast %53 : vector<8x16x4xf32> to vector<128x4xf32>
    %c0_39 = arith.constant 0 : index
    %c32 = arith.constant 32 : index
    %55 = vector.load %arg5[%c0_39, %c32] : memref<128x36xf32, #tpu.memory_space<vmem>>, vector<128x4xf32>
    tpu.vector_store %arg5[%c0_39, %c32], %54 {strides = array<i32>} : memref<128x36xf32, #tpu.memory_space<vmem>>, vector<128x4xf32>,
    %c0_40 = arith.constant 0 : index
    %c0_41 = arith.constant 0 : index
    %56 = vector.load %arg5[%c0_40, %c0_41] : memref<128x36xf32, #tpu.memory_space<vmem>>, vector<128x36xf32>
    %c0_42 = arith.constant 0 : index
    %c0_43 = arith.constant 0 : index
    %57 = vector.load %arg3[%c0_42, %c0_43] : memref<36x32xf32, #tpu.memory_space<vmem>>, vector<36x32xf32>
    %cst = arith.constant dense<0.000000e+00> : vector<128x32xf32>
    %58 = tpu.matmul %56, %57, %cst {dimension_numbers = #tpu.dot_dimension_numbers<[1], [0], [0], [1], [0, 0, 1, 1], [], []>} : vector<128x36xf32>, vector<36x32xf32>, vector<128x32xf32> -> vector<128x32xf32>
    %c0_44 = arith.constant 0 : index
    %c0_45 = arith.constant 0 : index
    %c0_46 = arith.constant 0 : index
    %59 = vector.load %arg4[%c0_44, %c0_45, %c0_46] : memref<1x128x32xf32, #tpu.memory_space<vmem>>, vector<1x128x32xf32>
    %60 = vector.shape_cast %59 : vector<1x128x32xf32> to vector<128x32xf32>
    %61 = vector.shape_cast %58 : vector<128x32xf32> to vector<1x128x32xf32>
    tpu.vector_store %arg4[%c0_44, %c0_45, %c0_46], %61 {strides = array<i32>} : memref<1x128x32xf32, #tpu.memory_space<vmem>>, vector<1x128x32xf32>,
    return
  }
  func.func @transform_0(%arg0: i32, %arg1: i32) -> (i32, i32, i32, i32) {
    %c0_i32 = arith.constant 0 : i32
    %c0_i32_0 = arith.constant 0 : i32
    %c0_i32_1 = arith.constant 0 : i32
    %c0_i32_2 = arith.constant 0 : i32
    return %arg0, %c0_i32, %c0_i32_0, %c0_i32_1 : i32, i32, i32, i32
  }
  func.func @transform_1(%arg0: i32, %arg1: i32) -> (i32, i32) {
    %c0_i32 = arith.constant 0 : i32
    %c0_i32_0 = arith.constant 0 : i32
    %c0_i32_1 = arith.constant 0 : i32
    return %c0_i32, %c0_i32_0 : i32, i32
  }
  func.func @transform_2(%arg0: i32, %arg1: i32) -> (i32, i32, i32) {
    %c0_i32 = arith.constant 0 : i32
    %c0_i32_0 = arith.constant 0 : i32
    return %arg0, %arg1, %c0_i32 : i32, i32, i32
  }
}

</mosaic_0001>

<bundles_post_ra>
// kernel: tpu_custom_call.1
= control target key start
LH: loop header
LB: loop body
LE: loop exit
PB: predicated region body
PF: predicated region fallthrough
CT: control target
= control target key end

     0   :  { %s1626_s9 = smov 0   ;;  %s1628_s10 = smov 0   ;;  %s2184_s0 = inlined_call_operand.vmem [shape: f32[2,18,18,4], index: 0, kind: input, shape index: {}]   ;;  %s2185_s1 = inlined_call_operand.vmem [shape: f32[36,32], index: 1, kind: input, shape index: {}]   ;;  %s2186_s2 = inlined_call_operand.vmem [shape: f32[2,256,32], index: 2, kind: output, shape index: {}]  }
   0x1   :  { %s1630_s11 = smov 0   ;;  %s1632_s12 = smov 0  }
   0x2   :  { %s1634_s13 = smov 0  }
   0x3 LB: > { %s21_s14 = sadd.s32 1, %s1593_s11  ;;  %s24_s15 = sadd.s32 1, %s1597_s12  ;;  %s1601_s13 = sphi %s1634_s13, %s12_s13   ;;  %s1597_s12 = sphi %s1632_s12, %s2190_s12   ;;  %s1593_s11 = sphi %s1630_s11, %s2189_s11   ;;  %s1589_s10 = sphi %s1628_s10, %s2188_s10   ;;  %s1585_s9 = sphi %s1626_s9, %s2187_s9  }
   0x4   : > { %p22_p0 = scmp.ge.s32.totalorder %s21_s14, 2  ;;  %p1319_p1 = scmp.ge.s32.totalorder %s1601_s13, 1 }
   0x5   : > { %p126_p2 = scmp.lt.s32.totalorder %s1601_s13, 5 }
   0x6   : > { %s2192_s14 = smov (%p22_p0, %s21_s14), 0  ;;  %s2194_s15 = smov (!%p22_p0, %s24_s15), %s1597_s12 }
   0x7   : > { %p127_p3 = pnand %p1319_p1, %p126_p2  ;;  %p26_p4 = scmp.ge.s32.totalorder %s2194_s15, 2 }
   0x8   : > { %p152_p5 = scmp.lt.s32.totalorder (!%p127_p3), %s1589_s10, 1  ;;  %s1325_s16 = smul.u32 (!%p127_p3), 192, %s1585_s9  ;;  %vm186_vm0 = vcmask (!%p127_p3), 31744   ;;  %v1001_v38 = vld [vmem:[%s2185_s1] sm:$0xff] (!%p127_p3)  ;;  %v1002_v39 = vld [vmem:[%s2185_s1 + $0x8] sm:$0xff] (!%p127_p3)  ;;  %v1003_v41 = vld [vmem:[%s2185_s1 + $0x10] sm:$0xff] (!%p127_p3) }
   0x9   : > { %s2196_s15 = smov (%p26_p4, %s2194_s15), 0  ;;  %130 = sbr.rel (%p127_p3) target bundleno = 612 (0x264), region = 28 }
   0xa   : > { %s1603_s22 = smov (!%p127_p3), 4   ;;  %s1604_s23 = smov (!%p127_p3), 8   ;;  %v1500_v40 = vpack.c.bf16 (!%p127_p3), %v1002_v39, %v1001_v38  ;;  %v1004_v42 = vld [vmem:[%s2185_s1 + $0x18] sm:$0xff] (!%p127_p3)  ;;  %v1005_v44 = vld [vmem:[%s2185_s1 + $0x20] sm:$0xf] (!%p127_p3)  ;;  %vm1055_vm1 = vcmask (!%p127_p3), 1043456  }
   0xb   : > { %s1605_s24 = smov (!%p127_p3), 12   ;;  %s1606_s25 = smov (!%p127_p3), 16   ;;  %v1504_v43 = vpack.c.bf16 (!%p127_p3), %v1004_v42, %v1003_v41  ;;  %vm283_vm2 = vcmask (!%p127_p3), 64544   ;;  %vm380_vm3 = vcmask (!%p127_p3), 97344   ;;  %vm480_vm4 = vcmask (!%p127_p3), 130144  }
   0xc   : > { %s1607_s26 = smov (!%p127_p3), 20   ;;  %s1608_s27 = smov (!%p127_p3), 24   ;;  %1501 = vmatprep.subr.bf16.mxu0 (!%p127_p3), %v1500_v40  ;;  %1508 = vmatprep.subr.bf16.mxu1 (!%p127_p3), %v1500_v40  ;;  %vm577_vm5 = vcmask (!%p127_p3), 162944   ;;  %vm674_vm6 = vcmask (!%p127_p3), 195744   ;;  %vm774_vm7 = vcmask (!%p127_p3), 228544   ;;  %vm871_vm8 = vcmask (!%p127_p3), 261344  }
   0xd   : > { %s1609_s28 = smov (!%p127_p3), 28   ;;  %s1610_s5 = smov (!%p127_p3), 32   ;;  %1503 = vmatpush3.bf16.msra.mxu0 (!%p127_p3), %v1500_v40  ;;  %1511 = vmatpush3.bf16.msra.mxu1 (!%p127_p3), %v1500_v40  ;;  %vm968_vm9 = vcmask (!%p127_p3), 294144   ;;  %vm1006_vm10 = vcmask (!%p127_p3), 293888   ;;  %vm1204_vm11 = vcmask (!%p127_p3), 261120  }
   0xe   : > { %1505 = vmatprep.subr.bf16.mxu0 (!%p127_p3), %v1504_v43  ;;  %1509 = vmatprep.subr.bf16.mxu1 (!%p127_p3), %v1504_v43  ;;  %s1321_s19 = sshll.u32 (!%p127_p3), %s1585_s9, 4 }
   0xf   : > { %p160_p6 = scmp.lt.s32.totalorder (!%p127_p3), %s1321_s19, 31 }
  0x10   : > { %s2198_s10 = smov (!%p152_p5, %s1589_s10), 1 }
  0x11   : > { %s1514_s17 = smul.u32 432, %s2198_s10  ;;  %1507 = vmatpush3.bf16.msra.mxu0 %v1504_v43  ;;  %1512 = vmatpush3.bf16.msra.mxu1 %v1504_v43  ;;  %s2200_s19 = smov (!%p160_p6, %s1321_s19), 31 }
  0x12   : > { %1474 = vmatprep.subr.msk.mxu0 %vm1055_vm1, %v1005_v44  ;;  %1510 = vmatprep.subr.msk.mxu1 %vm1055_vm1, %v1005_v44 }
  0x13   : > { %s156_s20 = scalar_lea.vmem %s2184_s0, %s1514_s17 }
  0x14   : > { %s1665_s21 = scalar_lea.vmem %s156_s20, %s1325_s16  ;;  %s1322_s20 = sshll.u32 %s2198_s10, 5 }
  0x15   : > { %v204_v0 = vld [vmem:[%s1665_s21 + $0x9] sm:$0xff]  ;;  %v203_v1 = vld [vmem:[%s1665_s21 + $0x1] sm:$0xff]  ;;  %v1678_v4 = vld [vmem:[%s1665_s21 + $0x78] sm:$0xff]  ;;  %1475 = vmatpush3.msk.msra.mxu0 %vm1055_vm1, %v1005_v44  ;;  %1513 = vmatpush3.msk.msra.mxu1 %vm1055_vm1, %v1005_v44 }
  0x16   : > { %237 = vrot.lane.b32.xlu1 %v204_v0, %s1603_s22  ;;  %235 = vrot.lane.b32.xlu0 %v203_v1, %s1603_s22  ;;  %v1672_v2 = vld [vmem:[%s1665_s21 + $0x69] sm:$0xff]  ;;  %v1675_v3 = vld [vmem:[%s1665_s21 + $0x61] sm:$0xff]  ;;  %197 = vst.msk [vmem:[#allocation2 + $0x50] sm:$0xff] %vm186_vm0, %v1678_v4 }
  0x17   : > { %v1328_v5 = vld [vmem:[%s1665_s21 + $0x18] sm:$0xff]  ;;  %v1682_v6 = vld [vmem:[%s1665_s21 + $0x80] sm:$0xff]  ;;  %v1700_v10 = vld [vmem:[%s1665_s21 + $0x90] sm:$0xff] }
  0x18   : > { %v1329_v7 = vld [vmem:[%s1665_s21 + $0x20] sm:$0xff]  ;;  %189 = vst.msk [vmem:[#allocation2 + $0x10] sm:$0xff] %vm186_vm0, %v1328_v5  ;;  %198 = vst.msk [vmem:[#allocation2 + $0x58] sm:$0xff] %vm186_vm0, %v1682_v6  ;;  %v1703_v11 = vld [vmem:[%s1665_s21 + $0x30] sm:$0xff] }
  0x19   : > { %190 = vst.msk [vmem:[#allocation2 + $0x18] sm:$0xff] %vm186_vm0, %v1329_v7  ;;  %v1696_v8 = vld [vmem:[%s1665_s21 + $0x62] sm:$0xff]  ;;  %v1706_v12 = vld [vmem:[%s1665_s21 + $0x98] sm:$0xff]  ;;  %199 = vst.msk [vmem:[#allocation2 + $0x60] sm:$0xff] %vm186_vm0, %v1700_v10 }
  0x1a   : > { %253 = vrot.lane.b32.xlu1 %v1672_v2, %s1603_s22  ;;  %251 = vrot.lane.b32.xlu0 %v1675_v3, %s1603_s22  ;;  %v300_v9 = vld [vmem:[%s1665_s21 + $0x2] sm:$0xff]  ;;  %v1709_v13 = vld [vmem:[%s1665_s21 + $0x38] sm:$0xff]  ;;  %191 = vst.msk [vmem:[#allocation2 + $0x20] sm:$0xff] %vm186_vm0, %v1703_v11  ;;  %200 = vst.msk [vmem:[#allocation2 + $0x68] sm:$0xff] %vm186_vm0, %v1706_v12 }
  0x1b   : > { %192 = vst.msk [vmem:[#allocation2 + $0x28] sm:$0xff] %vm186_vm0, %v1709_v13  ;;  %v1723_v14 = vld [vmem:[%s1665_s21 + $0x6a] sm:$0xff]  ;;  %v170_v17 = vld [vmem:[%s1665_s21] sm:$0xff]  ;;  %v1418_v36 = vld [vmem:[%s1665_s21 + $0x92] sm:$0xff] }
  0x1c   : > { %v301_v15 = vld [vmem:[%s1665_s21 + $0xa] sm:$0xff]  ;;  %187 = vst.msk [vmem:[#allocation2] sm:$0xff] %vm186_vm0, %v170_v17  ;;  %v1743_v21 = vld [vmem:[%s1665_s21 + $0x60] sm:$0xff]  ;;  %v1410_v37 = vld [vmem:[%s1665_s21 + $0x32] sm:$0xff] }
  0x1d   : > { %v171_v16 = vld [vmem:[%s1665_s21 + $0x8] sm:$0xff]  ;;  %195 = vst.msk [vmem:[#allocation2 + $0x40] sm:$0xff] %vm186_vm0, %v1743_v21  ;;  %v1754_v22 = vld [vmem:[%s1665_s21 + $0xb0] sm:$0xff]  ;;  %v1770_v24 = vld [vmem:[%s1665_s21 + $0x79] sm:$0xff] }
  0x1e   : > { %348 = vrot.lane.b32.xlu1 %v1696_v8, %s1604_s23  ;;  %332 = vrot.lane.b32.xlu0 %v300_v9, %s1604_s23  ;;  %188 = vst.msk [vmem:[#allocation2 + $0x8] sm:$0xff] %vm186_vm0, %v171_v16  ;;  %v1730_v18 = vld [vmem:[%s1665_s21 + $0xa8] sm:$0xff]  ;;  %v1757_v23 = vld [vmem:[%s1665_s21 + $0x50] sm:$0xff]  ;;  %202 = vst.msk [vmem:[#allocation2 + $0x78] sm:$0xff] %vm186_vm0, %v1754_v22 }
  0x1f   : > { %v1733_v19 = vld [vmem:[%s1665_s21 + $0x48] sm:$0xff]  ;;  %201 = vst.msk [vmem:[#allocation2 + $0x70] sm:$0xff] %vm186_vm0, %v1730_v18  ;;  %194 = vst.msk [vmem:[#allocation2 + $0x38] sm:$0xff] %vm186_vm0, %v1757_v23  ;;  %v1344_v25 = vld [vmem:[%s1665_s21 + $0x19] sm:$0xff] }
  0x20   : > { %v1740_v20 = vld [vmem:[%s1665_s21 + $0x68] sm:$0xff]  ;;  %193 = vst.msk [vmem:[#allocation2 + $0x30] sm:$0xff] %vm186_vm0, %v1733_v19  ;;  %v1787_v28 = vld [vmem:[%s1665_s21 + $0x7a] sm:$0xff]  ;;  %v1402_v32 = vld [vmem:[%s1665_s21 + $0x91] sm:$0xff] }
  0x21   : > { %196 = vst.msk [vmem:[#allocation2 + $0x48] sm:$0xff] %vm186_vm0, %v1740_v20  ;;  %v1780_v26 = vld [vmem:[%s1665_s21 + $0x81] sm:$0xff]  ;;  %v1394_v33 = vld [vmem:[%s1665_s21 + $0x31] sm:$0xff]  ;;  %v1403_v34 = vld [vmem:[%s1665_s21 + $0x99] sm:$0xff] }
  0x22   : > { %350 = vrot.lane.b32.xlu1 %v1723_v14, %s1604_s23  ;;  %334 = vrot.lane.b32.xlu0 %v301_v15, %s1604_s23  ;;  %v1345_v27 = vld [vmem:[%s1665_s21 + $0x21] sm:$0xff]  ;;  %v1395_v35 = vld [vmem:[%s1665_s21 + $0x39] sm:$0xff] }
  0x23   : > { %v1360_v29 = vld [vmem:[%s1665_s21 + $0x1a] sm:$0xff]  ;;  %v1800_v30 = vld [vmem:[%s1665_s21 + $0x82] sm:$0xff]  ;;  %v1405_v63 = vld [vmem:[%s1665_s21 + $0xb1] sm:$0xff] }
  0x24   : > { %v1361_v31 = vld [vmem:[%s1665_s21 + $0x22] sm:$0xff]  ;;  %v1419_v45 = vld [vmem:[%s1665_s21 + $0x9a] sm:$0xff]  ;;  %v1397_v0 = vld [vmem:[%s1665_s21 + $0x51] sm:$0xff] }
  0x25   : > { %v1411_v46 = vld [vmem:[%s1665_s21 + $0x3a] sm:$0xff]  ;;  %v1404_v55 = vld [vmem:[%s1665_s21 + $0xa9] sm:$0xff] }
  0x26   : > { %448 = vrot.lane.b32.xlu1 %v1678_v4, %s1605_s24  ;;  %432 = vrot.lane.b32.xlu0 %v1328_v5, %s1605_s24  ;;  %v1396_v56 = vld [vmem:[%s1665_s21 + $0x49] sm:$0xff] }
  0x27   : > { %v1412_v9 = vld [vmem:[%s1665_s21 + $0x4a] sm:$0xff] }
  0x28   : > { %v1391_v42 = vld [vmem:[%s1665_s21 + $0xc8] sm:$0xff] }
  0x2a   : > { %450 = vrot.lane.b32.xlu1 %v1682_v6, %s1605_s24  ;;  %434 = vrot.lane.b32.xlu0 %v1329_v7, %s1605_s24  ;;  %v1420_v7 = vld [vmem:[%s1665_s21 + $0xaa] sm:$0xff] }
  0x2e   : > { %545 = vrot.lane.b32.xlu1 %v1770_v24, %s1606_s25  ;;  %529 = vrot.lane.b32.xlu0 %v1344_v25, %s1606_s25 }
  0x32   : > { %255 = vrot.lane.b32.xlu1 %v1770_v24, %s1603_s22  ;;  %239 = vrot.lane.b32.xlu0 %v1344_v25, %s1603_s22 }
  0x36   : > { %547 = vrot.lane.b32.xlu1 %v1780_v26, %s1606_s25  ;;  %531 = vrot.lane.b32.xlu0 %v1345_v27, %s1606_s25 }
  0x3a   : > { %642 = vrot.lane.b32.xlu1 %v1787_v28, %s1607_s26  ;;  %626 = vrot.lane.b32.xlu0 %v1360_v29, %s1607_s26 }
  0x3e   : > { %257 = vrot.lane.b32.xlu1 %v1780_v26, %s1603_s22  ;;  %241 = vrot.lane.b32.xlu0 %v1345_v27, %s1603_s22 }
  0x42   : > { %352 = vrot.lane.b32.xlu1 %v1787_v28, %s1604_s23  ;;  %336 = vrot.lane.b32.xlu0 %v1360_v29, %s1604_s23 }
  0x46   : > { %644 = vrot.lane.b32.xlu1 %v1800_v30, %s1607_s26  ;;  %628 = vrot.lane.b32.xlu0 %v1361_v31, %s1607_s26 }
  0x4a   : > { %742 = vrot.lane.b32.xlu1 %v1700_v10, %s1608_s27  ;;  %726 = vrot.lane.b32.xlu0 %v1703_v11, %s1608_s27 }
  0x4e   : > { %354 = vrot.lane.b32.xlu1 %v1800_v30, %s1604_s23  ;;  %338 = vrot.lane.b32.xlu0 %v1361_v31, %s1604_s23 }
  0x52   : > { %452 = vrot.lane.b32.xlu1 %v1700_v10, %s1605_s24  ;;  %436 = vrot.lane.b32.xlu0 %v1703_v11, %s1605_s24 }
  0x56   : > { %744 = vrot.lane.b32.xlu1 %v1706_v12, %s1608_s27  ;;  %728 = vrot.lane.b32.xlu0 %v1709_v13, %s1608_s27 }
  0x5a   : > { %839 = vrot.lane.b32.xlu1 %v1402_v32, %s1609_s28  ;;  %823 = vrot.lane.b32.xlu0 %v1394_v33, %s1609_s28 }
  0x5e   : > { %454 = vrot.lane.b32.xlu1 %v1706_v12, %s1605_s24  ;;  %438 = vrot.lane.b32.xlu0 %v1709_v13, %s1605_s24 }
  0x62   : > { %549 = vrot.lane.b32.xlu1 %v1402_v32, %s1606_s25  ;;  %533 = vrot.lane.b32.xlu0 %v1394_v33, %s1606_s25 }
  0x66   : > { %841 = vrot.lane.b32.xlu1 %v1403_v34, %s1609_s28  ;;  %825 = vrot.lane.b32.xlu0 %v1395_v35, %s1609_s28 }
  0x6a   : > { %936 = vrot.lane.b32.xlu1 %v1418_v36, %s1610_s5  ;;  %920 = vrot.lane.b32.xlu0 %v1410_v37, %s1610_s5 }
  0x6e   : > { %259 = vrot.lane.b32.xlu1 %v1402_v32, %s1603_s22  ;;  %243 = vrot.lane.b32.xlu0 %v1394_v33, %s1603_s22 }
  0x72   : > { %551 = vrot.lane.b32.xlu1 %v1403_v34, %s1606_s25  ;;  %535 = vrot.lane.b32.xlu0 %v1395_v35, %s1606_s25 }
  0x76   : > { %646 = vrot.lane.b32.xlu1 %v1418_v36, %s1607_s26  ;;  %630 = vrot.lane.b32.xlu0 %v1410_v37, %s1607_s26 }
  0x7a   : > { %938 = vrot.lane.b32.xlu1 %v1419_v45, %s1610_s5  ;;  %922 = vrot.lane.b32.xlu0 %v1411_v46, %s1610_s5 }
  0x7e   : > { %261 = vrot.lane.b32.xlu1 %v1403_v34, %s1603_s22  ;;  %245 = vrot.lane.b32.xlu0 %v1395_v35, %s1603_s22  ;;  %v1390_v35 = vld [vmem:[%s1665_s21 + $0xc0] sm:$0xff] }
  0x82   : > { %356 = vrot.lane.b32.xlu1 %v1418_v36, %s1604_s23  ;;  %340 = vrot.lane.b32.xlu0 %v1410_v37, %s1604_s23 }
  0x86   : > { %648 = vrot.lane.b32.xlu1 %v1419_v45, %s1607_s26  ;;  %632 = vrot.lane.b32.xlu0 %v1411_v46, %s1607_s26 }
  0x88   : > { %v238_v47 = vpop.permute.xlu1 %237  ;;  %v236_v48 = vpop.permute.xlu0 %235 }
  0x89   : > { %285 = vst.msk [vmem:[#allocation2 + $0x8] sm:$0xff] %vm283_vm2, %v238_v47  ;;  %284 = vst.msk [vmem:[#allocation2] sm:$0xff] %vm283_vm2, %v236_v48 }
  0x8a   : > { %746 = vrot.lane.b32.xlu1 %v1730_v18, %s1608_s27  ;;  %730 = vrot.lane.b32.xlu0 %v1733_v19, %s1608_s27 }
  0x8c   : > { %v254_v49 = vpop.permute.xlu1 %253  ;;  %v252_v50 = vpop.permute.xlu0 %251 }
  0x8d   : > { %293 = vst.msk [vmem:[#allocation2 + $0x48] sm:$0xff] %vm283_vm2, %v254_v49  ;;  %292 = vst.msk [vmem:[#allocation2 + $0x40] sm:$0xff] %vm283_vm2, %v252_v50 }
  0x8e   : > { %358 = vrot.lane.b32.xlu1 %v1419_v45, %s1604_s23  ;;  %342 = vrot.lane.b32.xlu0 %v1411_v46, %s1604_s23  ;;  %v1406_v45 = vld [vmem:[%s1665_s21 + $0xc1] sm:$0xff] }
  0x90   : > { %v349_v51 = vpop.permute.xlu1 %348  ;;  %v333_v52 = vpop.permute.xlu0 %332 }
  0x91   : > { %389 = vst.msk [vmem:[#allocation2 + $0x40] sm:$0xff] %vm380_vm3, %v349_v51  ;;  %381 = vst.msk [vmem:[#allocation2] sm:$0xff] %vm380_vm3, %v333_v52  ;;  %v1407_v51 = vld [vmem:[%s1665_s21 + $0xc9] sm:$0xff] }
  0x92   : > { %456 = vrot.lane.b32.xlu1 %v1730_v18, %s1605_s24  ;;  %440 = vrot.lane.b32.xlu0 %v1733_v19, %s1605_s24  ;;  %v1421_v19 = vld [vmem:[%s1665_s21 + $0xb2] sm:$0xff] }
  0x94   : > { %v351_v53 = vpop.permute.xlu1 %350  ;;  %v335_v54 = vpop.permute.xlu0 %334 }
  0x95   : > { %390 = vst.msk [vmem:[#allocation2 + $0x48] sm:$0xff] %vm380_vm3, %v351_v53  ;;  %382 = vst.msk [vmem:[#allocation2 + $0x8] sm:$0xff] %vm380_vm3, %v335_v54 }
  0x96   : > { %748 = vrot.lane.b32.xlu1 %v1754_v22, %s1608_s27  ;;  %732 = vrot.lane.b32.xlu0 %v1757_v23, %s1608_s27 }
  0x98   : > { %v449_v57 = vpop.permute.xlu1 %448  ;;  %v433_v58 = vpop.permute.xlu0 %432 }
  0x99   : > { %489 = vst.msk [vmem:[#allocation2 + $0x40] sm:$0xff] %vm480_vm4, %v449_v57  ;;  %481 = vst.msk [vmem:[#allocation2] sm:$0xff] %vm480_vm4, %v433_v58 }
  0x9a   : > { %843 = vrot.lane.b32.xlu1 %v1404_v55, %s1609_s28  ;;  %827 = vrot.lane.b32.xlu0 %v1396_v56, %s1609_s28 }
  0x9c   : > { %v451_v59 = vpop.permute.xlu1 %450  ;;  %v435_v60 = vpop.permute.xlu0 %434 }
  0x9d   : > { %490 = vst.msk [vmem:[#allocation2 + $0x48] sm:$0xff] %vm480_vm4, %v451_v59  ;;  %482 = vst.msk [vmem:[#allocation2 + $0x8] sm:$0xff] %vm480_vm4, %v435_v60 }
  0x9e   : > { %458 = vrot.lane.b32.xlu1 %v1754_v22, %s1605_s24  ;;  %442 = vrot.lane.b32.xlu0 %v1757_v23, %s1605_s24  ;;  %v1413_v22 = vld [vmem:[%s1665_s21 + $0x52] sm:$0xff] }
  0xa0   : > { %v546_v61 = vpop.permute.xlu1 %545  ;;  %v530_v62 = vpop.permute.xlu0 %529 }
  0xa1   : > { %586 = vst.msk [vmem:[#allocation2 + $0x40] sm:$0xff] %vm577_vm5, %v546_v61  ;;  %578 = vst.msk [vmem:[#allocation2] sm:$0xff] %vm577_vm5, %v530_v62  ;;  %v1423_v61 = vld [vmem:[%s1665_s21 + $0xca] sm:$0xff] }
  0xa2   : > { %553 = vrot.lane.b32.xlu1 %v1404_v55, %s1606_s25  ;;  %537 = vrot.lane.b32.xlu0 %v1396_v56, %s1606_s25 }
  0xa4   : > { %v256_v1 = vpop.permute.xlu1 %255  ;;  %v240_v5 = vpop.permute.xlu0 %239 }
  0xa5   : > { %294 = vst.msk [vmem:[#allocation2 + $0x50] sm:$0xff] %vm283_vm2, %v256_v1  ;;  %286 = vst.msk [vmem:[#allocation2 + $0x10] sm:$0xff] %vm283_vm2, %v240_v5  ;;  %v1392_v5 = vld [vmem:[%s1665_s21 + $0xd8] sm:$0xff] }
  0xa6   : > { %845 = vrot.lane.b32.xlu1 %v1405_v63, %s1609_s28  ;;  %829 = vrot.lane.b32.xlu0 %v1397_v0, %s1609_s28 }
  0xa8   : > { %v548_v10 = vpop.permute.xlu1 %547  ;;  %v532_v11 = vpop.permute.xlu0 %531 }
  0xa9   : > { %587 = vst.msk [vmem:[#allocation2 + $0x48] sm:$0xff] %vm577_vm5, %v548_v10  ;;  %579 = vst.msk [vmem:[#allocation2 + $0x8] sm:$0xff] %vm577_vm5, %v532_v11  ;;  %v1393_v10 = vld [vmem:[%s1665_s21 + $0xe0] sm:$0xff] }
  0xaa   : > { %940 = vrot.lane.b32.xlu1 %v1420_v7, %s1610_s5  ;;  %924 = vrot.lane.b32.xlu0 %v1412_v9, %s1610_s5 }
  0xac   : > { %v643_v12 = vpop.permute.xlu1 %642  ;;  %v627_v13 = vpop.permute.xlu0 %626 }
  0xad   : > { %683 = vst.msk [vmem:[#allocation2 + $0x40] sm:$0xff] %vm674_vm6, %v643_v12  ;;  %675 = vst.msk [vmem:[#allocation2] sm:$0xff] %vm674_vm6, %v627_v13 }
  0xae   : > { %263 = vrot.lane.b32.xlu1 %v1404_v55, %s1603_s22  ;;  %247 = vrot.lane.b32.xlu0 %v1396_v56, %s1603_s22 }
  0xb0   : > { %v258_v15 = vpop.permute.xlu1 %257  ;;  %v242_v16 = vpop.permute.xlu0 %241 }
  0xb1   : > { %295 = vst.msk [vmem:[#allocation2 + $0x58] sm:$0xff] %vm283_vm2, %v258_v15  ;;  %287 = vst.msk [vmem:[#allocation2 + $0x18] sm:$0xff] %vm283_vm2, %v242_v16 }
  0xb2   : > { %555 = vrot.lane.b32.xlu1 %v1405_v63, %s1606_s25  ;;  %539 = vrot.lane.b32.xlu0 %v1397_v0, %s1606_s25 }
  0xb4   : > { %v353_v17 = vpop.permute.xlu1 %352  ;;  %v337_v18 = vpop.permute.xlu0 %336 }
  0xb5   : > { %391 = vst.msk [vmem:[#allocation2 + $0x50] sm:$0xff] %vm380_vm3, %v353_v17  ;;  %383 = vst.msk [vmem:[#allocation2 + $0x10] sm:$0xff] %vm380_vm3, %v337_v18 }
  0xb6   : > { %650 = vrot.lane.b32.xlu1 %v1420_v7, %s1607_s26  ;;  %634 = vrot.lane.b32.xlu0 %v1412_v9, %s1607_s26 }
  0xb8   : > { %v645_v23 = vpop.permute.xlu1 %644  ;;  %v629_v25 = vpop.permute.xlu0 %628 }
  0xb9   : > { %684 = vst.msk [vmem:[#allocation2 + $0x48] sm:$0xff] %vm674_vm6, %v645_v23  ;;  %676 = vst.msk [vmem:[#allocation2 + $0x8] sm:$0xff] %vm674_vm6, %v629_v25 }
  0xba   : > { %942 = vrot.lane.b32.xlu1 %v1421_v19, %s1610_s5  ;;  %926 = vrot.lane.b32.xlu0 %v1413_v22, %s1610_s5 }
  0xbc   : > { %v743_v27 = vpop.permute.xlu1 %742  ;;  %v727_v29 = vpop.permute.xlu0 %726 }
  0xbd   : > { %783 = vst.msk [vmem:[#allocation2 + $0x40] sm:$0xff] %vm774_vm7, %v743_v27  ;;  %775 = vst.msk [vmem:[#allocation2] sm:$0xff] %vm774_vm7, %v727_v29 }
  0xbe   : > { %265 = vrot.lane.b32.xlu1 %v1405_v63, %s1603_s22  ;;  %249 = vrot.lane.b32.xlu0 %v1397_v0, %s1603_s22 }
  0xc0   : > { %v355_v31 = vpop.permute.xlu1 %354  ;;  %v339_v32 = vpop.permute.xlu0 %338 }
  0xc1   : > { %392 = vst.msk [vmem:[#allocation2 + $0x58] sm:$0xff] %vm380_vm3, %v355_v31  ;;  %384 = vst.msk [vmem:[#allocation2 + $0x18] sm:$0xff] %vm380_vm3, %v339_v32 }
  0xc2   : > { %360 = vrot.lane.b32.xlu1 %v1420_v7, %s1604_s23  ;;  %344 = vrot.lane.b32.xlu0 %v1412_v9, %s1604_s23 }
  0xc4   : > { %v453_v33 = vpop.permute.xlu1 %452  ;;  %v437_v34 = vpop.permute.xlu0 %436 }
  0xc5   : > { %491 = vst.msk [vmem:[#allocation2 + $0x50] sm:$0xff] %vm480_vm4, %v453_v33  ;;  %483 = vst.msk [vmem:[#allocation2 + $0x10] sm:$0xff] %vm480_vm4, %v437_v34 }
  0xc6   : > { %652 = vrot.lane.b32.xlu1 %v1421_v19, %s1607_s26  ;;  %636 = vrot.lane.b32.xlu0 %v1413_v22, %s1607_s26 }
  0xc8   : > { %v745_v36 = vpop.permute.xlu1 %744  ;;  %v729_v37 = vpop.permute.xlu0 %728 }
  0xc9   : > { %784 = vst.msk [vmem:[#allocation2 + $0x48] sm:$0xff] %vm774_vm7, %v745_v36  ;;  %776 = vst.msk [vmem:[#allocation2 + $0x8] sm:$0xff] %vm774_vm7, %v729_v37 }
  0xca   : > { %750 = vrot.lane.b32.xlu1 %v1390_v35, %s1608_s27  ;;  %734 = vrot.lane.b32.xlu0 %v1743_v21, %s1608_s27 }
  0xcc   : > { %v840_v38 = vpop.permute.xlu1 %839  ;;  %v824_v39 = vpop.permute.xlu0 %823 }
  0xcd   : > { %880 = vst.msk [vmem:[#allocation2 + $0x40] sm:$0xff] %vm871_vm8, %v840_v38  ;;  %872 = vst.msk [vmem:[#allocation2] sm:$0xff] %vm871_vm8, %v824_v39 }
  0xce   : > { %362 = vrot.lane.b32.xlu1 %v1421_v19, %s1604_s23  ;;  %346 = vrot.lane.b32.xlu0 %v1413_v22, %s1604_s23 }
  0xd0   : > { %v455_v40 = vpop.permute.xlu1 %454  ;;  %v439_v41 = vpop.permute.xlu0 %438 }
  0xd1   : > { %492 = vst.msk [vmem:[#allocation2 + $0x58] sm:$0xff] %vm480_vm4, %v455_v40  ;;  %484 = vst.msk [vmem:[#allocation2 + $0x18] sm:$0xff] %vm480_vm4, %v439_v41 }
  0xd2   : > { %460 = vrot.lane.b32.xlu1 %v1390_v35, %s1605_s24  ;;  %444 = vrot.lane.b32.xlu0 %v1743_v21, %s1605_s24 }
  0xd4   : > { %v550_v43 = vpop.permute.xlu1 %549  ;;  %v534_v44 = vpop.permute.xlu0 %533 }
  0xd5   : > { %588 = vst.msk [vmem:[#allocation2 + $0x50] sm:$0xff] %vm577_vm5, %v550_v43  ;;  %580 = vst.msk [vmem:[#allocation2 + $0x10] sm:$0xff] %vm577_vm5, %v534_v44 }
  0xd6   : > { %752 = vrot.lane.b32.xlu1 %v1391_v42, %s1608_s27  ;;  %736 = vrot.lane.b32.xlu0 %v1740_v20, %s1608_s27 }
  0xd8   : > { %v842_v46 = vpop.permute.xlu1 %841  ;;  %v826_v47 = vpop.permute.xlu0 %825 }
  0xd9   : > { %881 = vst.msk [vmem:[#allocation2 + $0x48] sm:$0xff] %vm871_vm8, %v842_v46  ;;  %873 = vst.msk [vmem:[#allocation2 + $0x8] sm:$0xff] %vm871_vm8, %v826_v47 }
  0xda   : > { %847 = vrot.lane.b32.xlu1 %v1406_v45, %s1609_s28  ;;  %831 = vrot.lane.b32.xlu0 %v1675_v3, %s1609_s28 }
  0xdc   : > { %v937_v21 = vpop.permute.xlu1 %936  ;;  %v921_v48 = vpop.permute.xlu0 %920 }
  0xdd   : > { %977 = vst.msk [vmem:[#allocation2 + $0x40] sm:$0xff] %vm968_vm9, %v937_v21  ;;  %969 = vst.msk [vmem:[#allocation2] sm:$0xff] %vm968_vm9, %v921_v48 }
  0xde   : > { %462 = vrot.lane.b32.xlu1 %v1391_v42, %s1605_s24  ;;  %446 = vrot.lane.b32.xlu0 %v1740_v20, %s1605_s24 }
  0xe0   : > { %v260_v49 = vpop.permute.xlu1 %259  ;;  %v244_v50 = vpop.permute.xlu0 %243 }
  0xe1   : > { %296 = vst.msk [vmem:[#allocation2 + $0x60] sm:$0xff] %vm283_vm2, %v260_v49  ;;  %288 = vst.msk [vmem:[#allocation2 + $0x20] sm:$0xff] %vm283_vm2, %v244_v50 }
  0xe2   : > { %557 = vrot.lane.b32.xlu1 %v1406_v45, %s1606_s25  ;;  %541 = vrot.lane.b32.xlu0 %v1675_v3, %s1606_s25  ;;  %v1422_v3 = vld [vmem:[%s1665_s21 + $0xc2] sm:$0xff] }
  0xe4   : > { %v552_v52 = vpop.permute.xlu1 %551  ;;  %v536_v53 = vpop.permute.xlu0 %535  ;;  %v985_v54 = vld [vmem:[#allocation2] sm:$0xff] }
  0xe5   : > { %v993_v55 = vld [vmem:[#allocation2 + $0x40] sm:$0xff]  ;;  %589 = vst.msk [vmem:[#allocation2 + $0x58] sm:$0xff] %vm577_vm5, %v552_v52  ;;  %581 = vst.msk [vmem:[#allocation2 + $0x18] sm:$0xff] %vm577_vm5, %v536_v53  ;;  %1476 = vmatprep.mubr.msk.f32.mxu0 %vm1006_vm10, %v985_v54 }
  0xe6   : > { %1488 = vmatprep.mubr.msk.f32.mxu1 %vm1006_vm10, %v993_v55  ;;  %849 = vrot.lane.b32.xlu1 %v1407_v51, %s1609_s28 }
  0xe7   : > { %833 = vrot.lane.b32.xlu0 %v1672_v2, %s1609_s28 }
  0xe8   : > { %v647_v20 = vpop.permute.xlu1 %646  ;;  %v631_v56 = vpop.permute.xlu0 %630 }
  0xe9   : > { %685 = vst.msk [vmem:[#allocation2 + $0x50] sm:$0xff] %vm674_vm6, %v647_v20  ;;  %677 = vst.msk [vmem:[#allocation2 + $0x10] sm:$0xff] %vm674_vm6, %v631_v56 }
  0xea   : > { %944 = vrot.lane.b32.xlu1 %v1422_v3, %s1610_s5 }
  0xeb   : > { %928 = vrot.lane.b32.xlu0 %v1696_v8, %s1610_s5 }
  0xec   : > { %v939_v57 = vpop.permute.xlu1 %938  ;;  %v923_v58 = vpop.permute.xlu0 %922 }
  0xed   : > { %978 = vst.msk [vmem:[#allocation2 + $0x48] sm:$0xff] %vm968_vm9, %v939_v57  ;;  %970 = vst.msk [vmem:[#allocation2 + $0x8] sm:$0xff] %vm968_vm9, %v923_v58 }
  0xee   : > { %559 = vrot.lane.b32.xlu1 %v1407_v51, %s1606_s25 }
  0xef   : > { %543 = vrot.lane.b32.xlu0 %v1672_v2, %s1606_s25 }
  0xf0   : > { %v262_v59 = vpop.permute.xlu1 %261  ;;  %v246_v60 = vpop.permute.xlu0 %245 }
  0xf1   : > { %297 = vst.msk [vmem:[#allocation2 + $0x68] sm:$0xff] %vm283_vm2, %v262_v59  ;;  %289 = vst.msk [vmem:[#allocation2 + $0x28] sm:$0xff] %vm283_vm2, %v246_v60 }
  0xf2   : > { %654 = vrot.lane.b32.xlu1 %v1422_v3, %s1607_s26 }
  0xf3   : > { %638 = vrot.lane.b32.xlu0 %v1696_v8, %s1607_s26 }
  0xf4   : > { %v357_v62 = vpop.permute.xlu1 %356  ;;  %v341_v63 = vpop.permute.xlu0 %340  ;;  %v986_v0 = vld [vmem:[#allocation2 + $0x8] sm:$0xff] }
  0xf5   : > { %v994_v1 = vld [vmem:[#allocation2 + $0x48] sm:$0xff]  ;;  %393 = vst.msk [vmem:[#allocation2 + $0x60] sm:$0xff] %vm380_vm3, %v357_v62  ;;  %385 = vst.msk [vmem:[#allocation2 + $0x20] sm:$0xff] %vm380_vm3, %v341_v63  ;;  %1477 = vmatmul.mubr.msk.f32.vlgmr.msra.gmra.mrb[0].mxu0 %vm1006_vm10, %v986_v0 }
  0xf6   : > { %1489 = vmatmul.mubr.msk.f32.vlgmr.msra.gmra.mrb[0].mxu1 %vm1006_vm10, %v994_v1  ;;  %946 = vrot.lane.b32.xlu1 %v1423_v61, %s1610_s5 }
  0xf7   : > { %930 = vrot.lane.b32.xlu0 %v1723_v14, %s1610_s5 }
  0xf8   : > { %v649_v2 = vpop.permute.xlu1 %648  ;;  %v633_v8 = vpop.permute.xlu0 %632 }
  0xf9   : > { %686 = vst.msk [vmem:[#allocation2 + $0x58] sm:$0xff] %vm674_vm6, %v649_v2  ;;  %678 = vst.msk [vmem:[#allocation2 + $0x18] sm:$0xff] %vm674_vm6, %v633_v8 }
  0xfa   : > { %656 = vrot.lane.b32.xlu1 %v1423_v61, %s1607_s26 }
  0xfb   : > { %640 = vrot.lane.b32.xlu0 %v1723_v14, %s1607_s26  ;;  %v1408_v14 = vld [vmem:[%s1665_s21 + $0xd9] sm:$0xff] }
  0xfc   : > { %v747_v7 = vpop.permute.xlu1 %746  ;;  %v731_v9 = vpop.permute.xlu0 %730 }
  0xfd   : > { %785 = vst.msk [vmem:[#allocation2 + $0x50] sm:$0xff] %vm774_vm7, %v747_v7  ;;  %777 = vst.msk [vmem:[#allocation2 + $0x10] sm:$0xff] %vm774_vm7, %v731_v9 }
  0xfe   : > { %754 = vrot.lane.b32.xlu1 %v1392_v5, %s1608_s27 }
  0xff   : > { %738 = vrot.lane.b32.xlu0 %v1678_v4, %s1608_s27  ;;  %v1409_v4 = vld [vmem:[%s1665_s21 + $0xe1] sm:$0xff] }
 0x100   : > { %v359_v11 = vpop.permute.xlu1 %358  ;;  %v343_v12 = vpop.permute.xlu0 %342 }
 0x101   : > { %394 = vst.msk [vmem:[#allocation2 + $0x68] sm:$0xff] %vm380_vm3, %v359_v11  ;;  %386 = vst.msk [vmem:[#allocation2 + $0x28] sm:$0xff] %vm380_vm3, %v343_v12 }
 0x102   : > { %756 = vrot.lane.b32.xlu1 %v1393_v10, %s1608_s27 }
 0x103   : > { %740 = vrot.lane.b32.xlu0 %v1682_v6, %s1608_s27  ;;  %v1424_v6 = vld [vmem:[%s1665_s21 + $0xda] sm:$0xff] }
 0x104   : > { %v457_v13 = vpop.permute.xlu1 %456  ;;  %v441_v15 = vpop.permute.xlu0 %440 }
 0x105   : > { %493 = vst.msk [vmem:[#allocation2 + $0x60] sm:$0xff] %vm480_vm4, %v457_v13  ;;  %485 = vst.msk [vmem:[#allocation2 + $0x20] sm:$0xff] %vm480_vm4, %v441_v15 }
 0x106   : > { %851 = vrot.lane.b32.xlu1 %v1408_v14, %s1609_s28 }
 0x107   : > { %835 = vrot.lane.b32.xlu0 %v1770_v24, %s1609_s28  ;;  %v1425_v24 = vld [vmem:[%s1665_s21 + $0xe2] sm:$0xff]  ;;  %s163_s21 = sadd.s32 %s1322_s20, %s2200_s19 }
 0x108   : > { %v749_v16 = vpop.permute.xlu1 %748  ;;  %v733_v17 = vpop.permute.xlu0 %732  ;;  %s1323_s22 = sshll.u32 %s163_s21, 3 }
 0x109   : > { %786 = vst.msk [vmem:[#allocation2 + $0x58] sm:$0xff] %vm774_vm7, %v749_v16  ;;  %778 = vst.msk [vmem:[#allocation2 + $0x18] sm:$0xff] %vm774_vm7, %v733_v17  ;;  %s2135_s25 = scalar_lea.vmem %s2186_s2, %s1323_s22 }
 0x10a   : > { %853 = vrot.lane.b32.xlu1 %v1409_v4, %s1609_s28 }
 0x10b   : > { %837 = vrot.lane.b32.xlu0 %v1780_v26, %s1609_s28 }
 0x10c   : > { %v844_v18 = vpop.permute.xlu1 %843  ;;  %v828_v19 = vpop.permute.xlu0 %827 }
 0x10d   : > { %882 = vst.msk [vmem:[#allocation2 + $0x50] sm:$0xff] %vm871_vm8, %v844_v18  ;;  %874 = vst.msk [vmem:[#allocation2 + $0x10] sm:$0xff] %vm871_vm8, %v828_v19 }
 0x10e   : > { %948 = vrot.lane.b32.xlu1 %v1424_v6, %s1610_s5 }
 0x10f   : > { %932 = vrot.lane.b32.xlu0 %v1787_v28, %s1610_s5 }
 0x110   : > { %v459_v22 = vpop.permute.xlu1 %458  ;;  %v443_v23 = vpop.permute.xlu0 %442 }
 0x111   : > { %494 = vst.msk [vmem:[#allocation2 + $0x68] sm:$0xff] %vm480_vm4, %v459_v22  ;;  %486 = vst.msk [vmem:[#allocation2 + $0x28] sm:$0xff] %vm480_vm4, %v443_v23 }
 0x112   : > { %950 = vrot.lane.b32.xlu1 %v1425_v24, %s1610_s5 }
 0x113   : > { %934 = vrot.lane.b32.xlu0 %v1800_v30, %s1610_s5 }
 0x114   : > { %v554_v26 = vpop.permute.xlu1 %553  ;;  %v538_v25 = vpop.permute.xlu0 %537 }
 0x115   : > { %590 = vst.msk [vmem:[#allocation2 + $0x60] sm:$0xff] %vm577_vm5, %v554_v26  ;;  %582 = vst.msk [vmem:[#allocation2 + $0x20] sm:$0xff] %vm577_vm5, %v538_v25 }
 0x118   : > { %v846_v27 = vpop.permute.xlu1 %845  ;;  %v830_v28 = vpop.permute.xlu0 %829 }
 0x119   : > { %883 = vst.msk [vmem:[#allocation2 + $0x58] sm:$0xff] %vm871_vm8, %v846_v27  ;;  %875 = vst.msk [vmem:[#allocation2 + $0x18] sm:$0xff] %vm871_vm8, %v830_v28 }
 0x11c   : > { %v941_v29 = vpop.permute.xlu1 %940  ;;  %v925_v31 = vpop.permute.xlu0 %924 }
 0x11d   : > { %979 = vst.msk [vmem:[#allocation2 + $0x50] sm:$0xff] %vm968_vm9, %v941_v29  ;;  %971 = vst.msk [vmem:[#allocation2 + $0x10] sm:$0xff] %vm968_vm9, %v925_v31 }
 0x120   : > { %v264_v32 = vpop.permute.xlu1 %263  ;;  %v248_v30 = vpop.permute.xlu0 %247 }
 0x121   : > { %298 = vst.msk [vmem:[#allocation2 + $0x70] sm:$0xff] %vm283_vm2, %v264_v32  ;;  %290 = vst.msk [vmem:[#allocation2 + $0x30] sm:$0xff] %vm283_vm2, %v248_v30 }
 0x124   : > { %v556_v33 = vpop.permute.xlu1 %555  ;;  %v540_v34 = vpop.permute.xlu0 %539  ;;  %v987_v35 = vld [vmem:[#allocation2 + $0x10] sm:$0xff] }
 0x125   : > { %v995_v36 = vld [vmem:[#allocation2 + $0x50] sm:$0xff]  ;;  %591 = vst.msk [vmem:[#allocation2 + $0x68] sm:$0xff] %vm577_vm5, %v556_v33  ;;  %583 = vst.msk [vmem:[#allocation2 + $0x28] sm:$0xff] %vm577_vm5, %v540_v34  ;;  %1479 = vmatprep.mubr.msk.f32.mxu0 %vm1006_vm10, %v987_v35 }
 0x126   : > { %1491 = vmatprep.mubr.msk.f32.mxu1 %vm1006_vm10, %v995_v36 }
 0x128   : > { %v651_v37 = vpop.permute.xlu1 %650  ;;  %v635_v38 = vpop.permute.xlu0 %634 }
 0x129   : > { %687 = vst.msk [vmem:[#allocation2 + $0x60] sm:$0xff] %vm674_vm6, %v651_v37  ;;  %679 = vst.msk [vmem:[#allocation2 + $0x20] sm:$0xff] %vm674_vm6, %v635_v38 }
 0x12c   : > { %v943_v39 = vpop.permute.xlu1 %942  ;;  %v927_v40 = vpop.permute.xlu0 %926 }
 0x12d   : > { %980 = vst.msk [vmem:[#allocation2 + $0x58] sm:$0xff] %vm968_vm9, %v943_v39  ;;  %972 = vst.msk [vmem:[#allocation2 + $0x18] sm:$0xff] %vm968_vm9, %v927_v40 }
 0x130   : > { %v266_v41 = vpop.permute.xlu1 %265  ;;  %v250_v42 = vpop.permute.xlu0 %249 }
 0x131   : > { %299 = vst.msk [vmem:[#allocation2 + $0x78] sm:$0xff] %vm283_vm2, %v266_v41  ;;  %291 = vst.msk [vmem:[#allocation2 + $0x38] sm:$0xff] %vm283_vm2, %v250_v42 }
 0x134   : > { %v361_v43 = vpop.permute.xlu1 %360  ;;  %v345_v44 = vpop.permute.xlu0 %344  ;;  %v988_v45 = vld [vmem:[#allocation2 + $0x18] sm:$0xff] }
 0x135   : > { %v996_v46 = vld [vmem:[#allocation2 + $0x58] sm:$0xff]  ;;  %395 = vst.msk [vmem:[#allocation2 + $0x70] sm:$0xff] %vm380_vm3, %v361_v43  ;;  %387 = vst.msk [vmem:[#allocation2 + $0x30] sm:$0xff] %vm380_vm3, %v345_v44  ;;  %1480 = vmatmul.mubr.msk.f32.gmra.mrb[2].mxu0 %vm1006_vm10, %v988_v45 }
 0x136   : > { %1492 = vmatmul.mubr.msk.f32.gmra.mrb[2].mxu1 %vm1006_vm10, %v996_v46 }
 0x138   : > { %v653_v47 = vpop.permute.xlu1 %652  ;;  %v637_v21 = vpop.permute.xlu0 %636 }
 0x139   : > { %688 = vst.msk [vmem:[#allocation2 + $0x68] sm:$0xff] %vm674_vm6, %v653_v47  ;;  %680 = vst.msk [vmem:[#allocation2 + $0x28] sm:$0xff] %vm674_vm6, %v637_v21 }
 0x13c   : > { %v751_v48 = vpop.permute.xlu1 %750  ;;  %v735_v49 = vpop.permute.xlu0 %734 }
 0x13d   : > { %787 = vst.msk [vmem:[#allocation2 + $0x60] sm:$0xff] %vm774_vm7, %v751_v48  ;;  %779 = vst.msk [vmem:[#allocation2 + $0x20] sm:$0xff] %vm774_vm7, %v735_v49 }
 0x140   : > { %v363_v50 = vpop.permute.xlu1 %362  ;;  %v347_v51 = vpop.permute.xlu0 %346 }
 0x141   : > { %396 = vst.msk [vmem:[#allocation2 + $0x78] sm:$0xff] %vm380_vm3, %v363_v50  ;;  %388 = vst.msk [vmem:[#allocation2 + $0x38] sm:$0xff] %vm380_vm3, %v347_v51 }
 0x144   : > { %v461_v52 = vpop.permute.xlu1 %460  ;;  %v445_v53 = vpop.permute.xlu0 %444 }
 0x145   : > { %495 = vst.msk [vmem:[#allocation2 + $0x70] sm:$0xff] %vm480_vm4, %v461_v52  ;;  %487 = vst.msk [vmem:[#allocation2 + $0x30] sm:$0xff] %vm480_vm4, %v445_v53 }
 0x148   : > { %v753_v54 = vpop.permute.xlu1 %752  ;;  %v737_v55 = vpop.permute.xlu0 %736 }
 0x149   : > { %788 = vst.msk [vmem:[#allocation2 + $0x68] sm:$0xff] %vm774_vm7, %v753_v54  ;;  %780 = vst.msk [vmem:[#allocation2 + $0x28] sm:$0xff] %vm774_vm7, %v737_v55 }
 0x14c   : > { %v848_v3 = vpop.permute.xlu1 %847  ;;  %v832_v20 = vpop.permute.xlu0 %831 }
 0x14d   : > { %884 = vst.msk [vmem:[#allocation2 + $0x60] sm:$0xff] %vm871_vm8, %v848_v3  ;;  %876 = vst.msk [vmem:[#allocation2 + $0x20] sm:$0xff] %vm871_vm8, %v832_v20 }
 0x150   : > { %v463_v56 = vpop.permute.xlu1 %462  ;;  %v447_v57 = vpop.permute.xlu0 %446 }
 0x151   : > { %496 = vst.msk [vmem:[#allocation2 + $0x78] sm:$0xff] %vm480_vm4, %v463_v56  ;;  %488 = vst.msk [vmem:[#allocation2 + $0x38] sm:$0xff] %vm480_vm4, %v447_v57 }
 0x154   : > { %v558_v58 = vpop.permute.xlu1 %557  ;;  %v542_v59 = vpop.permute.xlu0 %541 }
 0x155   : > { %592 = vst.msk [vmem:[#allocation2 + $0x70] sm:$0xff] %vm577_vm5, %v558_v58  ;;  %584 = vst.msk [vmem:[#allocation2 + $0x30] sm:$0xff] %vm577_vm5, %v542_v59 }
 0x158   : > { %v850_v60 = vpop.permute.xlu1 %849 }
 0x159   : > { %v834_v61 = vpop.permute.xlu0 %833  ;;  %885 = vst.msk [vmem:[#allocation2 + $0x68] sm:$0xff] %vm871_vm8, %v850_v60 }
 0x15a   : > { %877 = vst.msk [vmem:[#allocation2 + $0x28] sm:$0xff] %vm871_vm8, %v834_v61 }
 0x15c   : > { %v945_v62 = vpop.permute.xlu1 %944 }
 0x15d   : > { %v929_v63 = vpop.permute.xlu0 %928  ;;  %981 = vst.msk [vmem:[#allocation2 + $0x60] sm:$0xff] %vm968_vm9, %v945_v62 }
 0x15e   : > { %973 = vst.msk [vmem:[#allocation2 + $0x20] sm:$0xff] %vm968_vm9, %v929_v63 }
 0x160   : > { %v560_v0 = vpop.permute.xlu1 %559 }
 0x161   : > { %v544_v1 = vpop.permute.xlu0 %543  ;;  %593 = vst.msk [vmem:[#allocation2 + $0x78] sm:$0xff] %vm577_vm5, %v560_v0 }
 0x162   : > { %585 = vst.msk [vmem:[#allocation2 + $0x38] sm:$0xff] %vm577_vm5, %v544_v1 }
 0x164   : > { %v655_v2 = vpop.permute.xlu1 %654  ;;  %v997_v7 = vld [vmem:[#allocation2 + $0x60] sm:$0xff] }
 0x165   : > { %v639_v8 = vpop.permute.xlu0 %638  ;;  %v989_v5 = vld [vmem:[#allocation2 + $0x20] sm:$0xff]  ;;  %689 = vst.msk [vmem:[#allocation2 + $0x70] sm:$0xff] %vm674_vm6, %v655_v2  ;;  %1494 = vmatprep.mubr.msk.f32.mxu1 %vm1006_vm10, %v997_v7 }
 0x166   : > { %681 = vst.msk [vmem:[#allocation2 + $0x30] sm:$0xff] %vm674_vm6, %v639_v8  ;;  %1482 = vmatprep.mubr.msk.f32.mxu0 %vm1006_vm10, %v989_v5 }
 0x168   : > { %v947_v9 = vpop.permute.xlu1 %946 }
 0x169   : > { %v931_v10 = vpop.permute.xlu0 %930  ;;  %982 = vst.msk [vmem:[#allocation2 + $0x68] sm:$0xff] %vm968_vm9, %v947_v9 }
 0x16a   : > { %974 = vst.msk [vmem:[#allocation2 + $0x28] sm:$0xff] %vm968_vm9, %v931_v10 }
 0x16c   : > { %v657_v11 = vpop.permute.xlu1 %656 }
 0x16d   : > { %v641_v12 = vpop.permute.xlu0 %640  ;;  %690 = vst.msk [vmem:[#allocation2 + $0x78] sm:$0xff] %vm674_vm6, %v657_v11 }
 0x16e   : > { %682 = vst.msk [vmem:[#allocation2 + $0x38] sm:$0xff] %vm674_vm6, %v641_v12 }
 0x170   : > { %v755_v14 = vpop.permute.xlu1 %754  ;;  %v998_v4 = vld [vmem:[#allocation2 + $0x68] sm:$0xff] }
 0x171   : > { %v739_v13 = vpop.permute.xlu0 %738  ;;  %v990_v15 = vld [vmem:[#allocation2 + $0x28] sm:$0xff]  ;;  %789 = vst.msk [vmem:[#allocation2 + $0x70] sm:$0xff] %vm774_vm7, %v755_v14  ;;  %1495 = vmatmul.mubr.msk.f32.gmra.mrb[4].mxu1 %vm1006_vm10, %v998_v4 }
 0x172   : > { %781 = vst.msk [vmem:[#allocation2 + $0x30] sm:$0xff] %vm774_vm7, %v739_v13  ;;  %1483 = vmatmul.mubr.msk.f32.gmra.mrb[4].mxu0 %vm1006_vm10, %v990_v15 }
 0x174   : > { %v757_v16 = vpop.permute.xlu1 %756 }
 0x175   : > { %v741_v17 = vpop.permute.xlu0 %740  ;;  %790 = vst.msk [vmem:[#allocation2 + $0x78] sm:$0xff] %vm774_vm7, %v757_v16 }
 0x176   : > { %782 = vst.msk [vmem:[#allocation2 + $0x38] sm:$0xff] %vm774_vm7, %v741_v17 }
 0x178   : > { %v852_v6 = vpop.permute.xlu1 %851 }
 0x179   : > { %v836_v18 = vpop.permute.xlu0 %835  ;;  %886 = vst.msk [vmem:[#allocation2 + $0x70] sm:$0xff] %vm871_vm8, %v852_v6 }
 0x17a   : > { %878 = vst.msk [vmem:[#allocation2 + $0x30] sm:$0xff] %vm871_vm8, %v836_v18 }
 0x17c   : > { %v854_v19 = vpop.permute.xlu1 %853 }
 0x17d   : > { %v838_v24 = vpop.permute.xlu0 %837  ;;  %887 = vst.msk [vmem:[#allocation2 + $0x78] sm:$0xff] %vm871_vm8, %v854_v19 }
 0x17e   : > { %879 = vst.msk [vmem:[#allocation2 + $0x38] sm:$0xff] %vm871_vm8, %v838_v24 }
 0x180   : > { %v949_v22 = vpop.permute.xlu1 %948 }
 0x181   : > { %v933_v23 = vpop.permute.xlu0 %932  ;;  %983 = vst.msk [vmem:[#allocation2 + $0x70] sm:$0xff] %vm968_vm9, %v949_v22 }
 0x182   : > { %975 = vst.msk [vmem:[#allocation2 + $0x30] sm:$0xff] %vm968_vm9, %v933_v23 }
 0x184   : > { %v951_v26 = vpop.permute.xlu1 %950 }
 0x185   : > { %v935_v25 = vpop.permute.xlu0 %934  ;;  %984 = vst.msk [vmem:[#allocation2 + $0x78] sm:$0xff] %vm968_vm9, %v951_v26 }
 0x186   : > { %976 = vst.msk [vmem:[#allocation2 + $0x38] sm:$0xff] %vm968_vm9, %v935_v25 }
 0x188   : > { %v999_v28 = vld [vmem:[#allocation2 + $0x70] sm:$0xff] }
 0x189   : > { %v991_v27 = vld [vmem:[#allocation2 + $0x30] sm:$0xff]  ;;  %1497 = vmatprep.mubr.msk.f32.mxu1 %vm1006_vm10, %v999_v28 }
 0x18a   : > { %1485 = vmatprep.mubr.msk.f32.mxu0 %vm1006_vm10, %v991_v27 }
 0x18c   : > { %v1000_v31 = vld [vmem:[#allocation2 + $0x78] sm:$0xff] }
 0x18d   : > { %v992_v29 = vld [vmem:[#allocation2 + $0x38] sm:$0xff]  ;;  %1498 = vmatmul.mubr.msk.f32.gmra.mrb[6].mxu1 %vm1006_vm10, %v1000_v31 }
 0x18e   : > { %1486 = vmatmul.mubr.msk.f32.gmra.mrb[6].mxu0 %vm1006_vm10, %v992_v29 }
 0x1c8   : > { %v1478_v32 = vpop.f32.mrb[0].mxu0 }
 0x1c9   : > { %v1490_v30 = vpop.f32.mrb[0].mxu1  ;;  %1206 = vst.msk [vmem:[%s2135_s25 + $0x8] sm:$0xff] %vm1204_vm11, %v1478_v32  ;;  %v1125_v33 = vpop.f32.mrb[1].mxu0 }
 0x1ca   : > { %1214 = vst.msk [vmem:[%s2135_s25 + $0x48] sm:$0xff] %vm1204_vm11, %v1490_v30  ;;  %v1165_v34 = vpop.f32.mrb[1].mxu1  ;;  %1205 = vst.msk [vmem:[%s2135_s25] sm:$0xff] %vm1204_vm11, %v1125_v33 }
 0x1cb   : > { %1213 = vst.msk [vmem:[%s2135_s25 + $0x40] sm:$0xff] %vm1204_vm11, %v1165_v34 }
 0x208   : > { %v1481_v35 = vpop.f32.mrb[2].mxu0 }
 0x209   : > { %v1493_v36 = vpop.f32.mrb[2].mxu1  ;;  %1208 = vst.msk [vmem:[%s2135_s25 + $0x18] sm:$0xff] %vm1204_vm11, %v1481_v35  ;;  %v1135_v37 = vpop.f32.mrb[3].mxu0 }
 0x20a   : > { %1216 = vst.msk [vmem:[%s2135_s25 + $0x58] sm:$0xff] %vm1204_vm11, %v1493_v36  ;;  %v1175_v38 = vpop.f32.mrb[3].mxu1  ;;  %1207 = vst.msk [vmem:[%s2135_s25 + $0x10] sm:$0xff] %vm1204_vm11, %v1135_v37 }
 0x20b   : > { %1215 = vst.msk [vmem:[%s2135_s25 + $0x50] sm:$0xff] %vm1204_vm11, %v1175_v38 }
 0x244   : > { %v1496_v40 = vpop.f32.mrb[4].mxu1 }
 0x245   : > { %v1484_v39 = vpop.f32.mrb[4].mxu0  ;;  %1218 = vst.msk [vmem:[%s2135_s25 + $0x68] sm:$0xff] %vm1204_vm11, %v1496_v40  ;;  %v1185_v42 = vpop.f32.mrb[5].mxu1 }
 0x246   : > { %1210 = vst.msk [vmem:[%s2135_s25 + $0x28] sm:$0xff] %vm1204_vm11, %v1484_v39  ;;  %v1145_v41 = vpop.f32.mrb[5].mxu0  ;;  %1217 = vst.msk [vmem:[%s2135_s25 + $0x60] sm:$0xff] %vm1204_vm11, %v1185_v42 }
 0x247   : > { %1209 = vst.msk [vmem:[%s2135_s25 + $0x20] sm:$0xff] %vm1204_vm11, %v1145_v41 }
 0x260   : > { %v1499_v44 = vpop.f32.mrb[6].mxu1 }
 0x261   : > { %v1487_v43 = vpop.f32.mrb[6].mxu0  ;;  %1220 = vst.msk [vmem:[%s2135_s25 + $0x78] sm:$0xff] %vm1204_vm11, %v1499_v44  ;;  %v1195_v46 = vpop.f32.mrb[7].mxu1 }
 0x262   : > { %1212 = vst.msk [vmem:[%s2135_s25 + $0x38] sm:$0xff] %vm1204_vm11, %v1487_v43  ;;  %v1155_v45 = vpop.f32.mrb[7].mxu0  ;;  %1219 = vst.msk [vmem:[%s2135_s25 + $0x70] sm:$0xff] %vm1204_vm11, %v1195_v46 }
 0x263   : > { %1211 = vst.msk [vmem:[%s2135_s25 + $0x30] sm:$0xff] %vm1204_vm11, %v1155_v45 }
 0x264 PF: > { %s12_s13 = sadd.s32 1, %s1601_s13   ;;  %s2187_s9 = smov %s1593_s11 }
 0x265   : > { %p9_p7 = scmp.ge.s32.totalorder %s12_s13, 6   ;;  %s2188_s10 = smov %s1597_s12 }
 0x266   : > { %s2189_s11 = smov %s2192_s14  ;;  %s2190_s12 = smov %s2196_s15 }
 0x267   :  { %11 = sbr.rel (!%p9_p7) target bundleno = 3 (0x3), region = 61 }

</bundles_post_ra>
